<compile_context>
chip_gen: v7x
topology: tpu7x:2x2x1
jax: 0.10.0
libtpu: 0.0.40
codegen_flags: <defaults>
</compile_context>

<pallas_src>
import numpy as np
import jax
import jax.numpy as jnp
from jax.experimental import pallas as pl
from jax.experimental.pallas import tpu as pltpu

HIDDEN = 32          # hidden_size
T_END = 4.0          # t_end (not None)
DX = 0.05            # TaylorInt grid step

# Max samples per grid step (lane axis).
LANE_TILE_BF16 = 16384   # v6e / v7x
LANE_TILE_F32 = 8192     # v5e and older / unknown (single vst slot, no bf16 EUP)


# ------------------------------ chip helpers ------------------------------ #
def _round_up(v, m):
    return ((v + m - 1) // m) * m


def _chip_gen():
    """Best-effort TPU generation: 7 (v7x), 6 (v6e), 5 (v5e/older/unknown)."""
    try:
        kind = jax.devices()[0].device_kind.lower()
    except Exception:
        return 5
    if "v7" in kind or "7x" in kind:
        return 7
    if "v6" in kind:
        return 6
    return 5


def _tile_config(m, gen):
    """Choose (lane tile TN, padded length MP, grid steps).

    Pick the step count first, then a 128-aligned tile, so padding stays
    <128 lanes per step (never a full dead tile).  On v7x force an even
    number of >=2 steps so the 'parallel' axis shards across both TCs.
    """
    lane_tile = LANE_TILE_BF16 if gen >= 6 else LANE_TILE_F32
    mp = max(128, _round_up(m, 128))
    num_steps = -(-mp // lane_tile)
    if gen == 7:
        num_steps = max(num_steps, 2)
        if num_steps % 2:
            num_steps += 1
    tn = _round_up(-(-mp // num_steps), 128)
    mp = tn * num_steps
    return tn, mp, num_steps


# ----------------------------- Pallas kernels ------------------------------ #
def _mlp_kernel_bf16(x_ref, wcol_ref, wmat_ref, o_ref):
    """v6e/v7x path: bf16 tanh chain feeding the MXU directly; f32 softplus."""
    x = x_ref[...]                               # (1, TN) f32

    w1 = wcol_ref[:, 0:1]                        # (H, 1) f32
    b1 = wcol_ref[:, 1:2]
    b2 = wcol_ref[:, 2:3]
    b3 = wcol_ref[:, 3:4]
    b4 = wcol_ref[0:1, 5:6]                      # (1, 1) f32

    # Layer 1: Linear(1,H)+Tanh -- rank-1 VPU broadcast, f32 accumulate,
    # bf16 tanh output (becomes the bf16 MXU operand with no extra cast pass).
    h = jnp.tanh((w1 * x + b1).astype(jnp.bfloat16))                     # (H,TN) bf16

    # Layers 2 & 3: bf16 MXU with f32 accumulation; bias add f32, tanh bf16.
    h = jnp.tanh((jnp.dot(wmat_ref[0], h,
                          preferred_element_type=jnp.float32) + b2
                  ).astype(jnp.bfloat16))
    h = jnp.tanh((jnp.dot(wmat_ref[1], h,
                          preferred_element_type=jnp.float32) + b3
                  ).astype(jnp.bfloat16))

    # Layer 4 on the (idle) MXU: w4 lives in row 0 of wmat[2] (rows 1..7 zero),
    # so an (8,H)x(H,TN) bf16 dot gives the Linear(H,1) output in row 0 with
    # f32 accumulation -- no f32 re-promotion of h, no cross-sublane reduce.
    z8 = jnp.dot(wmat_ref[2][0:8, :], h, preferred_element_type=jnp.float32)
    z = z8[0:1, :] + b4                                                  # (1,TN) f32

    # Stable softplus: one exp + one log1p per sample (EUP), f32.
    o_ref[...] = jnp.maximum(z, 0.0) + jnp.log1p(jnp.exp(-jnp.abs(z)))


def _mlp_kernel_f32(x_ref, wcol_ref, wmat_ref, o_ref):
    """v5e path: f32 VPU/EUP chain, bf16 only at the MXU inputs."""
    x = x_ref[...]                               # (1, TN) f32

    w1 = wcol_ref[:, 0:1]
    b1 = wcol_ref[:, 1:2]
    b2 = wcol_ref[:, 2:3]
    b3 = wcol_ref[:, 3:4]
    w4 = wcol_ref[:, 4:5]
    b4 = wcol_ref[0:1, 5:6]

    # Layer 1: rank-1, pure VPU broadcast.
    h = jnp.tanh(w1 * x + b1)                                            # (H,TN) f32

    # Layers 2 & 3: bf16 MXU inputs, f32 accumulation and tanh.
    h = jnp.tanh(jnp.dot(wmat_ref[0], h.astype(jnp.bfloat16),
                         preferred_element_type=jnp.float32) + b2)
    h = jnp.tanh(jnp.dot(wmat_ref[1], h.astype(jnp.bfloat16),
                         preferred_element_type=jnp.float32) + b3)

    # Layer 4: VPU multiply + cross-sublane reduce (XLU), f32.
    z = jnp.sum(w4 * h, axis=0, keepdims=True) + b4                      # (1,TN) f32

    o_ref[...] = jnp.maximum(z, 0.0) + jnp.log1p(jnp.exp(-jnp.abs(z)))


def mlp_apply(x_flat, params):
    """Apply the intensity MLP f to a flat vector of scalars via Pallas."""
    wcol, wmat = params
    h = HIDDEN
    m = int(x_flat.shape[0])
    gen = _chip_gen()
    tn, mp, num_steps = _tile_config(m, gen)

    x = jnp.zeros((1, mp), jnp.float32).at[0, :m].set(x_flat.astype(jnp.float32))

    kernel = _mlp_kernel_bf16 if gen >= 6 else _mlp_kernel_f32

    # Advisory cost hints only.
    flops = mp * (2 * 2 * h * h + 2 * 8 * h + 6 * h)
    transcendentals = mp * (3 * h + 2)
    bytes_accessed = 8 * mp + wcol.size * 4 + wmat.size * 2

    out = pl.pallas_call(
        kernel,
        out_shape=jax.ShapeDtypeStruct((1, mp), jnp.float32),
        grid=(num_steps,),
        in_specs=[
            pl.BlockSpec((1, tn), lambda i: (0, i)),        # x tile (lane-dense)
            pl.BlockSpec((h, 8), lambda i: (0, 0)),         # packed vectors (resident)
            pl.BlockSpec((3, h, h), lambda i: (0, 0, 0)),   # packed W2/W3/w4 (resident)
        ],
        out_specs=pl.BlockSpec((1, tn), lambda i: (0, i)),
        compiler_params=pltpu.CompilerParams(
            dimension_semantics=("parallel",),
            # intermediates ~6-8 x 32 x TN x 4B (<=16 MiB at TN=16K); 32 MiB
            # leaves headroom everywhere incl. v7x's 64 MiB physical VMEM.
            vmem_limit_bytes=32 * 1024 * 1024),
        cost_estimate=pl.CostEstimate(
            flops=flops,
            transcendentals=transcendentals,
            bytes_accessed=bytes_accessed),
    )(x, wcol, wmat)
    return out[0, :m]


# ------------------------------- parameters ------------------------------- #
def init_params(key, hidden):
    ks = jax.random.split(key, 8)

    def lin(kw, kb, fan_in, fan_out):
        bound = 1.0 / np.sqrt(fan_in)
        w = jax.random.uniform(kw, (fan_out, fan_in), jnp.float32, -bound, bound)
        b = jax.random.uniform(kb, (fan_out,), jnp.float32, -bound, bound)
        return w, b

    w1, b1 = lin(ks[0], ks[1], 1, hidden)        # (H,1), (H,)
    w2, b2 = lin(ks[2], ks[3], hidden, hidden)   # (H,H), (H,)
    w3, b3 = lin(ks[4], ks[5], hidden, hidden)
    w4, b4 = lin(ks[6], ks[7], hidden, 1)        # (1,H), (1,)

    # Pack all "vector" params into one (H, 8) f32 operand:
    # columns = [w1, b1, b2, b3, w4^T (f32 path), b4 (broadcast), 0, 0]
    wcol = jnp.zeros((hidden, 8), jnp.float32)
    wcol = wcol.at[:, 0].set(w1[:, 0])
    wcol = wcol.at[:, 1].set(b1)
    wcol = wcol.at[:, 2].set(b2)
    wcol = wcol.at[:, 3].set(b3)
    wcol = wcol.at[:, 4].set(w4[0, :])
    wcol = wcol.at[:, 5].set(jnp.full((hidden,), b4[0]))

    # Pack W2, W3 and w4 (row 0 of slot 2, rest zero) into one bf16 operand.
    wmat = jnp.zeros((3, hidden, hidden), jnp.float32)
    wmat = wmat.at[0].set(w2).at[1].set(w3)
    wmat = wmat.at[2, 0, :].set(w4[0, :])
    wmat = wmat.astype(jnp.bfloat16)
    return wcol, wmat


# ------------------------- TaylorInt approximation ------------------------ #
# TODO(synk): TaylorInt source (src/integration/numint.py) not provided; we
# implement it as cumulative trapezoid over a [0, t_end] grid (step DX) plus a
# first-order Taylor correction around the floor grid point.
def taylor_int(f_grid, xs_grid, dx, x_query):
    trap = 0.5 * (f_grid[:-1] + f_grid[1:]) * dx
    F = jnp.concatenate([jnp.zeros((1,), jnp.float32), jnp.cumsum(trap)])
    idx = jnp.clip(jnp.floor(x_query / dx).astype(jnp.int32),
                   0, xs_grid.shape[0] - 1)
    return F[idx] + f_grid[idx] * (x_query - xs_grid[idx])


# --------------------------------- forward -------------------------------- #
def forward(seq_pads, seq_lens, params, background, t_end):
    batch, maxlen, _ = seq_pads.shape
    t = seq_pads[..., 0]                                     # (B, L)

    # pairwise differences t_i - t_j for j < i (row-major, like torch.tril_indices)
    rows, cols = np.tril_indices(maxlen - 1)
    P = rows.shape[0]
    diff_tril = t[:, rows + 1] - t[:, cols]                  # (B, P)

    # TaylorInt grid
    n_grid = int(round(t_end / DX)) + 1
    xs_grid = jnp.arange(n_grid, dtype=jnp.float32) * DX

    # one Pallas MLP call over every scalar f needs to see
    all_x = jnp.concatenate([diff_tril.reshape(-1), xs_grid])
    all_f = mlp_apply(all_x, params)
    lambs_pair = all_f[:batch * P].reshape(batch, P)         # f(t_i - t_j)
    f_grid = all_f[batch * P:]

    # sum influences of earlier events per target event (== torch split+sum)
    seg_ids = jnp.asarray(np.concatenate(
        [np.full(r + 1, r, np.int32) for r in range(maxlen - 1)]))
    lamb_sum = jax.ops.segment_sum(lambs_pair.T, seg_ids,
                                   num_segments=maxlen - 1).T          # (B, L-1)
    lambs = jnp.concatenate(
        [jnp.zeros((batch, 1), jnp.float32), lamb_sum], -1) + background  # (B, L)

    # integral of f from 0 to (t_end - t_i), zero for padded positions
    pos = jnp.arange(maxlen)
    mask = pos[None, :] < seq_lens[:, None]                  # (B, L)
    dpwl = jnp.where(mask, t_end - t, 0.0)
    lamb_ints = taylor_int(f_grid, xs_grid, DX,
                           dpwl.reshape(-1)).reshape(batch, maxlen)

    sum_log_lambs = jnp.sum(jnp.where(mask, jnp.log(lambs), 0.0))
    lamb_ints = jnp.sum(lamb_ints, -1) + t_end * background  # (B,) + background_int
    nll = -(sum_log_lambs - jnp.sum(lamb_ints)) / batch
    return nll


# ----------------------------------- main ---------------------------------- #
if __name__ == "__main__":
    key = jax.random.PRNGKey(0)
    k_par, k_gap = jax.random.split(key)

    batch, maxlen = 2, 8
    params = init_params(k_par, HIDDEN)
    background = jnp.ones((1,), jnp.float32)                 # torch.ones(1) Parameter

    # deterministic event sequences: increasing timings inside (0, T_END)
    gaps = jax.random.uniform(k_gap, (batch, maxlen), jnp.float32, 0.05, 0.4)
    times = jnp.cumsum(gaps, axis=1)                         # strictly increasing, < 3.2
    seq_lens = jnp.array([8, 5], jnp.int32)
    mask = jnp.arange(maxlen)[None, :] < seq_lens[:, None]
    times = jnp.where(mask, times, 0.0)                      # zero-pad past seq_len
    seq_pads = times[..., None]                              # (B, L, 1)

    nll = forward(seq_pads, seq_lens, params, background, T_END)
    nll = jax.block_until_ready(nll)
    assert jnp.isfinite(nll).all()
    print("KERNEL_OK")
</pallas_src>

<mosaic_0001>
module attributes {stable_mosaic.version = 11 : i64} {
  func.func @_mlp_kernel_f32(%arg0: i32, %arg1: memref<1x256xf32, #tpu.memory_space<vmem>>, %arg2: memref<32x8xf32, #tpu.memory_space<vmem>>, %arg3: memref<3x32x32xbf16, #tpu.memory_space<vmem>>, %arg4: memref<1x256xf32, #tpu.memory_space<vmem>>) attributes {dimension_semantics = [#tpu.dimension_semantics<parallel>], iteration_bounds = array<i64: 1>, scalar_prefetch = 0 : i64, scratch_operands = 0 : i64, tpu.core_type = #tpu.core_type<tc>, window_params = [{transform_indices = @transform_0, window_bounds = array<i64: 1, 256>}, {pipeline_mode = #tpu.pipeline_mode<synchronous>, transform_indices = @transform_1, window_bounds = array<i64: 32, 8>}, {pipeline_mode = #tpu.pipeline_mode<synchronous>, transform_indices = @transform_2, window_bounds = array<i64: 3, 32, 32>}, {transform_indices = @transform_3, window_bounds = array<i64: 1, 256>}]} {
    %c0 = arith.constant 0 : index
    %c0_0 = arith.constant 0 : index
    %0 = vector.load %arg1[%c0, %c0_0] : memref<1x256xf32, #tpu.memory_space<vmem>>, vector<1x256xf32>
    %c0_1 = arith.constant 0 : index
    %c0_2 = arith.constant 0 : index
    %1 = vector.load %arg2[%c0_1, %c0_2] : memref<32x8xf32, #tpu.memory_space<vmem>>, vector<32x1xf32>
    %c0_3 = arith.constant 0 : index
    %c1 = arith.constant 1 : index
    %2 = vector.load %arg2[%c0_3, %c1] : memref<32x8xf32, #tpu.memory_space<vmem>>, vector<32x1xf32>
    %c0_4 = arith.constant 0 : index
    %c2 = arith.constant 2 : index
    %3 = vector.load %arg2[%c0_4, %c2] : memref<32x8xf32, #tpu.memory_space<vmem>>, vector<32x1xf32>
    %c0_5 = arith.constant 0 : index
    %c3 = arith.constant 3 : index
    %4 = vector.load %arg2[%c0_5, %c3] : memref<32x8xf32, #tpu.memory_space<vmem>>, vector<32x1xf32>
    %c0_6 = arith.constant 0 : index
    %c4 = arith.constant 4 : index
    %5 = vector.load %arg2[%c0_6, %c4] : memref<32x8xf32, #tpu.memory_space<vmem>>, vector<32x1xf32>
    %c0_7 = arith.constant 0 : index
    %c5 = arith.constant 5 : index
    %6 = vector.load %arg2[%c0_7, %c5] : memref<32x8xf32, #tpu.memory_space<vmem>>, vector<1x1xf32>
    %7 = vector.broadcast %1 : vector<32x1xf32> to vector<32x256xf32>
    %8 = vector.broadcast %0 : vector<1x256xf32> to vector<32x256xf32>
    %9 = arith.mulf %7, %8 : vector<32x256xf32>
    %10 = vector.broadcast %2 : vector<32x1xf32> to vector<32x256xf32>
    %11 = arith.addf %9, %10 : vector<32x256xf32>
    %12 = math.tanh %11 : vector<32x256xf32>
    %c0_8 = arith.constant 0 : index
    %c0_9 = arith.constant 0 : index
    %c0_10 = arith.constant 0 : index
    %13 = vector.load %arg3[%c0_8, %c0_9, %c0_10] : memref<3x32x32xbf16, #tpu.memory_space<vmem>>, vector<1x32x32xbf16>
    %14 = vector.shape_cast %13 : vector<1x32x32xbf16> to vector<32x32xbf16>
    %15 = arith.truncf %12 : vector<32x256xf32> to vector<32x256xbf16>
    %cst = arith.constant dense<0.000000e+00> : vector<32x256xf32>
    %16 = tpu.matmul %14, %15, %cst {dimension_numbers = #tpu.dot_dimension_numbers<[1], [0], [0], [1], [0, 0, 1, 1], [], []>} : vector<32x32xbf16>, vector<32x256xbf16>, vector<32x256xf32> -> vector<32x256xf32>
    %17 = vector.broadcast %3 : vector<32x1xf32> to vector<32x256xf32>
    %18 = arith.addf %16, %17 : vector<32x256xf32>
    %19 = math.tanh %18 : vector<32x256xf32>
    %c1_11 = arith.constant 1 : index
    %c0_12 = arith.constant 0 : index
    %c0_13 = arith.constant 0 : index
    %20 = vector.load %arg3[%c1_11, %c0_12, %c0_13] : memref<3x32x32xbf16, #tpu.memory_space<vmem>>, vector<1x32x32xbf16>
    %21 = vector.shape_cast %20 : vector<1x32x32xbf16> to vector<32x32xbf16>
    %22 = arith.truncf %19 : vector<32x256xf32> to vector<32x256xbf16>
    %cst_14 = arith.constant dense<0.000000e+00> : vector<32x256xf32>
    %23 = tpu.matmul %21, %22, %cst_14 {dimension_numbers = #tpu.dot_dimension_numbers<[1], [0], [0], [1], [0, 0, 1, 1], [], []>} : vector<32x32xbf16>, vector<32x256xbf16>, vector<32x256xf32> -> vector<32x256xf32>
    %24 = vector.broadcast %4 : vector<32x1xf32> to vector<32x256xf32>
    %25 = arith.addf %23, %24 : vector<32x256xf32>
    %26 = math.tanh %25 : vector<32x256xf32>
    %27 = vector.broadcast %5 : vector<32x1xf32> to vector<32x256xf32>
    %28 = arith.mulf %27, %26 : vector<32x256xf32>
    %cst_15 = arith.constant dense<0.000000e+00> : vector<256xf32>
    %29 = vector.multi_reduction <add>, %28, %cst_15 [0] : vector<32x256xf32> to vector<256xf32>
    %30 = vector.shape_cast %29 : vector<256xf32> to vector<1x256xf32>
    %31 = vector.broadcast %6 : vector<1x1xf32> to vector<1x256xf32>
    %32 = arith.addf %30, %31 : vector<1x256xf32>
    %cst_16 = arith.constant 0.000000e+00 : f32
    %33 = vector.broadcast %cst_16 : f32 to vector<1x256xf32>
    %34 = arith.maximumf %32, %33 : vector<1x256xf32>
    %35 = math.absf %32 : vector<1x256xf32>
    %cst_17 = arith.constant 0.000000e+00 : f32
    %36 = vector.broadcast %cst_17 : f32 to vector<1x256xf32>
    %37 = arith.subf %36, %35 : vector<1x256xf32>
    %38 = math.exp %37 : vector<1x256xf32>
    %39 = math.log1p %38 : vector<1x256xf32>
    %40 = arith.addf %34, %39 : vector<1x256xf32>
    %c0_18 = arith.constant 0 : index
    %c0_19 = arith.constant 0 : index
    %41 = vector.load %arg4[%c0_18, %c0_19] : memref<1x256xf32, #tpu.memory_space<vmem>>, vector<1x256xf32>
    tpu.vector_store %arg4[%c0_18, %c0_19], %40 {strides = array<i32>} : memref<1x256xf32, #tpu.memory_space<vmem>>, vector<1x256xf32>,
    return
  }
  func.func @transform_0(%arg0: i32) -> (i32, i32) {
    %c0_i32 = arith.constant 0 : i32
    %c0_i32_0 = arith.constant 0 : i32
    return %c0_i32, %arg0 : i32, i32
  }
  func.func @transform_1(%arg0: i32) -> (i32, i32) {
    %c0_i32 = arith.constant 0 : i32
    %c0_i32_0 = arith.constant 0 : i32
    %c0_i32_1 = arith.constant 0 : i32
    return %c0_i32, %c0_i32_0 : i32, i32
  }
  func.func @transform_2(%arg0: i32) -> (i32, i32, i32) {
    %c0_i32 = arith.constant 0 : i32
    %c0_i32_0 = arith.constant 0 : i32
    %c0_i32_1 = arith.constant 0 : i32
    %c0_i32_2 = arith.constant 0 : i32
    return %c0_i32, %c0_i32_0, %c0_i32_1 : i32, i32, i32
  }
  func.func @transform_3(%arg0: i32) -> (i32, i32) {
    %c0_i32 = arith.constant 0 : i32
    %c0_i32_0 = arith.constant 0 : i32
    return %c0_i32, %arg0 : i32, i32
  }
}

</mosaic_0001>

<bundles_post_ra>
// kernel: tpu_custom_call.1
= control target key start
LH: loop header
LB: loop body
LE: loop exit
PB: predicated region body
PF: predicated region fallthrough
CT: control target
= control target key end

     0   :  { %8 = vsyncpa [#allocation3], 0  ;;  %s685_s0 = inlined_call_operand.vmem [shape: f32[1,256], index: 0, kind: input, shape index: {}]   ;;  %s686_s1 = inlined_call_operand.vmem [shape: f32[32,8], index: 1, kind: input, shape index: {}]   ;;  %s687_s2 = inlined_call_operand.hbm [shape: bf16[3,32,32], index: 2, kind: input, shape index: {}]   ;;  %s688_s3 = inlined_call_operand.hbm [shape: f32[1,256], index: 3, kind: output, shape index: {}]  }
   0x1   :  { %9 = vsyncpa [#allocation4], 0  ;;  %s567_s12 = smov [#allocation2]   ;;  %s519_s16 = scalar_lea.hbm %s687_s2, 768 }
   0x2   :  { %s19_s13 = sshll.u32 %s567_s12, 4  ;;  %p520_p0 = scmp.ne.s32.totalorder %s687_s2, %s519_s16  ;;  %s20_s13 = int_to_ptr.vmem [resolvable:$true] %s19_s13 }
   0x3   :  { %p523_p1 = scmp.lt.u32.totalorder %s519_s16, %s687_s2 }
   0x5   :  { %p525_p2 = pnand %p523_p1, %p520_p0 }
   0x7   :  { %528 = shalt.err (!%p525_p2)
}
   0x8   :  { %s529_s21 = scalar_lea.vmem %s20_s13, 768  ;;  %p534_p4 = scmp.lt.s32.totalorder %s20_s13, %s20_s13 }
   0x9   :  { %p530_p3 = scmp.ne.s32.totalorder %s20_s13, %s529_s21  ;;  %p535_p5 = scmp.lt.s32.totalorder %s529_s21, %s529_s21 }
   0xb   :  { %p536_p6 = por %p535_p5, %p534_p4 }
   0xd   :  { %p537_p7 = pnand %p536_p6, %p530_p3 }
   0xf   :  { %540 = shalt.err (!%p537_p7)
}
  0x10   :  { %s568_s22 = smov 64   ;;  %s569_s23 = smov 4  }
  0x11   :  { %25 = dma.hbm_to_vmem [thread:$0]  %s687_s2, 768, %s20_s13, [#allocation3], %s568_s22, %s568_s22, %s569_s23  }
  0x12   :  { %563 = dma.done.wait [#allocation3], 768  }
  0x13   :  { %564 = vsyncadd [#allocation3], 4294966528  ;;  %v570_v0 = vmov 1   ;;  %v571_v1 = vmov 0   ;;  %v616_v2 = vld [vmem:[%s686_s1] sm:$0xff]  ;;  %v623_v3 = vld [vmem:[%s686_s1 + $0x8] sm:$0xff]  ;;  %v57_v7 = vlaneseq }
  0x14   :  { %448 = vset.pattern.permute.xlu1 %v570_v0  ;;  %447 = vset.pattern.permute.xlu0 %v571_v1  ;;  %v630_v4 = vld [vmem:[%s686_s1 + $0x10] sm:$0xff]  ;;  %v635_v5 = vld [vmem:[%s686_s1 + $0x18] sm:$0xff]  ;;  %v572_v6 = vmov 2   ;;  %v30_v11 = vld [vmem:[%s685_s0] sm:$0x3]  ;;  %vm141_vm0 = vcmask 261120  }
  0x15   :  { %180 = vmatprep.mubr.bf16.mxu0 %v571_v1  ;;  %282 = vmatprep.mubr.bf16.mxu1 %v571_v1  ;;  %v647_v8 = vshrl.u32 %v57_v7, 7  ;;  %v459_v50 = vld [vmem:[#allocation2] sm:$0xff]   ;;  %v460_v51 = vld [vmem:[#allocation2 + $0x8] sm:$0xff]   ;;  %v573_v52 = vmov 3   ;;  %v574_v53 = vmov 4   ;;  %v575_v55 = vmov 5  }
  0x16   :  { %76 = vperm.xlu1 %448, %v616_v2   ;;  %38 = vperm.xlu0 %447, %v616_v2   ;;  %v35_v54 = vld [vmem:[%s686_s1] sm:$0x1]  ;;  %s577_s1 = smov [#allocation5]   ;;  %vm410_vm3 = vcmp.lt.s32.totalorder %v57_v7, 256 }
  0x17   :  { %v59_v9 = vsub.s32 0, %v647_v8  ;;  %v63_v10 = vsub.s32 1, %v647_v8  ;;  %s419_s9 = sshll.u32 %s577_s1, 4  ;;  %s420_s9 = int_to_ptr.vmem [resolvable:$true] %s419_s9 }
  0x18   :  { %s541_s10 = scalar_lea.vmem %s420_s9, 32  ;;  %p546_p9 = scmp.lt.s32.totalorder %s420_s9, %s420_s9 }
  0x19   :  { %v60_v12 = vrot.slane %v30_v11, %v59_v9  ;;  %v64_v13 = vrot.slane %v30_v11, %v63_v10  ;;  %p542_p8 = scmp.ne.s32.totalorder %s420_s9, %s541_s10  ;;  %p547_p10 = scmp.lt.s32.totalorder %s541_s10, %s541_s10 }
  0x1a   :  { %80 = vperm.xlu1 %448, %v623_v3   ;;  %43 = vperm.xlu0 %447, %v623_v3  }
  0x1b   :  { %p548_p11 = por %p547_p10, %p546_p9 }
  0x1d   :  { %p549_p12 = pnand %p548_p11, %p542_p8 }
  0x1e   :  { %449 = vset.pattern.permute.xlu1 %v571_v1  ;;  %48 = vperm.xlu0 %447, %v630_v4  }
  0x1f   :  { %53 = vperm.xlu1 %449, %v635_v5  }
  0x22   :  { %450 = vset.pattern.permute.xlu0 %v570_v0 }
  0x23   :  { %451 = vset.pattern.permute.xlu1 %v570_v0  ;;  %84 = vperm.xlu0 %450, %v630_v4  }
  0x24   :  { %88 = vperm.xlu1 %451, %v635_v5  }
  0x27   :  { %453 = vset.pattern.permute.xlu0 %v572_v6 }
  0x28   :  { %452 = vset.pattern.permute.xlu1 %v572_v6  ;;  %120 = vperm.xlu0 %453, %v623_v3  }
  0x29   :  { %116 = vperm.xlu1 %452, %v616_v2  }
  0x2c   :  { %454 = vset.pattern.permute.xlu0 %v573_v52 }
  0x2d   :  { %124 = vperm.xlu1 %452, %v630_v4   ;;  %219 = vperm.xlu0 %454, %v616_v2  }
  0x31   :  { %128 = vperm.xlu1 %452, %v635_v5   ;;  %231 = vperm.xlu0 %454, %v635_v5  }
  0x35   :  { %455 = vset.pattern.permute.xlu1 %v573_v52  ;;  %457 = vset.pattern.permute.xlu0 %v574_v53 }
  0x36   :  { %223 = vperm.xlu1 %455, %v623_v3   ;;  %316 = vperm.xlu0 %457, %v623_v3  }
  0x3a   :  { %227 = vperm.xlu1 %455, %v630_v4   ;;  %458 = vset.pattern.permute.xlu0 %v575_v55 }
  0x3b   :  { %355 = vperm.xlu0 %458, %v35_v54  }
  0x3e   :  { %456 = vset.pattern.permute.xlu1 %v574_v53 }
  0x3f   :  { %312 = vperm.xlu1 %456, %v616_v2  }
  0x43   :  { %320 = vperm.xlu1 %456, %v630_v4  }
  0x47   :  { %324 = vperm.xlu1 %456, %v635_v5  }
  0x95   :  { %v77_v14 = vpop.permute.xlu1 %76  ;;  %v39_v15 = vpop.permute.xlu0 %38 }
  0x96   :  { %v67_v16 = vmul.f32 %v60_v12, %v39_v15  ;;  %v68_v17 = vmul.f32 %v64_v13, %v39_v15 }
  0x98   :  { %v91_v18 = vadd.f32 %v77_v14, %v67_v16  ;;  %v92_v19 = vadd.f32 %v77_v14, %v68_v17 }
  0x99   :  { %v81_v20 = vpop.permute.xlu1 %80  ;;  %v44_v21 = vpop.permute.xlu0 %43 }
  0x9a   :  { %v69_v22 = vmul.f32 %v60_v12, %v44_v21  ;;  %v70_v23 = vmul.f32 %v64_v13, %v44_v21  ;;  %463 = vtanh.f32 %v91_v18 }
  0x9b   :  { %465 = vtanh.f32 %v92_v19 }
  0x9c   :  { %v93_v24 = vadd.f32 %v81_v20, %v69_v22  ;;  %v94_v25 = vadd.f32 %v81_v20, %v70_v23 }
  0x9d   :  { %v49_v26 = vpop.permute.xlu0 %48 }
  0x9e   :  { %467 = vtanh.f32 %v93_v24  ;;  %v54_v27 = vpop.permute.xlu1 %53  ;;  %v71_v28 = vmul.f32 %v60_v12, %v49_v26  ;;  %v72_v29 = vmul.f32 %v64_v13, %v49_v26 }
  0x9f   :  { %469 = vtanh.f32 %v94_v25  ;;  %v73_v30 = vmul.f32 %v60_v12, %v54_v27  ;;  %v74_v31 = vmul.f32 %v64_v13, %v54_v27  ;;  %v461_v27 = vld [vmem:[#allocation2 + $0x10] sm:$0xff]  }
  0xa2   :  { %v85_v32 = vpop.permute.xlu0 %84 }
  0xa3   :  { %v95_v33 = vadd.f32 %v85_v32, %v71_v28  ;;  %v96_v34 = vadd.f32 %v85_v32, %v72_v29  ;;  %v89_v35 = vpop.permute.xlu1 %88  ;;  %v462_v28 = vld [vmem:[#allocation2 + $0x18] sm:$0xff]  }
  0xa4   :  { %v97_v36 = vadd.f32 %v89_v35, %v73_v30  ;;  %v98_v37 = vadd.f32 %v89_v35, %v74_v31  ;;  %v464_v38 = vpop.eup %463 }
  0xa5   :  { %471 = vtanh.f32 %v95_v33  ;;  %v466_v39 = vpop.eup %465 }
  0xa6   :  { %473 = vtanh.f32 %v96_v34 }
  0xa7   :  { %475 = vtanh.f32 %v97_v36  ;;  %v121_v58 = vpop.permute.xlu0 %120 }
  0xa8   :  { %v468_v40 = vpop.eup %467  ;;  %477 = vtanh.f32 %v98_v37  ;;  %v117_v56 = vpop.permute.xlu1 %116 }
  0xa9   :  { %v470_v41 = vpop.eup %469  ;;  %v111_v42 = vpack.c.bf16 %v468_v40, %v464_v38 }
  0xaa   :  { %v112_v43 = vpack.c.bf16 %v470_v41, %v466_v39 }
  0xac   :  { %148 = vmatprep.subr.bf16.mxu0 %v112_v43  ;;  %v125_v2 = vpop.permute.xlu1 %124  ;;  %v220_v29 = vpop.permute.xlu0 %219 }
  0xad   :  { %149 = vmatpush1.bf16.msra.mxu0 %v111_v42 }
  0xaf   :  { %v472_v44 = vpop.eup %471 }
  0xb0   :  { %v474_v45 = vpop.eup %473  ;;  %v129_v10 = vpop.permute.xlu1 %128 }
  0xb1   :  { %v476_v46 = vpop.eup %475 }
  0xb2   :  { %v478_v47 = vpop.eup %477  ;;  %v113_v48 = vpack.c.bf16 %v476_v46, %v472_v44 }
  0xb3   :  { %v114_v49 = vpack.c.bf16 %v478_v47, %v474_v45 }
  0xb5   :  { %150 = vmatprep.subr.bf16.mxu0 %v114_v49  ;;  %v224_v30 = vpop.permute.xlu1 %223 }
  0xb6   :  { %151 = vmatpush1.bf16.msra.mxu0 %v113_v48 }
  0xb9   :  { %430 = vmatmul.mubr.msk.bf16.vlgmr.msra.gmra.mrb[0].mxu0 %vm141_vm0, %v459_v50  ;;  %v228_v39 = vpop.permute.xlu1 %227 }
  0xba   :  { %190 = vmatprep.mubr.bf16.mxu0 %v571_v1 }
  0xbe   :  { %v313_v45 = vpop.permute.xlu1 %312 }
  0xc1   :  { %431 = vmatmul.mubr.msk.bf16.gmra.mrb[4].mxu0 %vm141_vm0, %v460_v51 }
 0x18c   :  { %v182_v57 = vpop.f32.mrb[0].mxu0 }
 0x18d   :  { %v183_v59 = vadd.f32 %v182_v57, %v117_v56  ;;  %v184_v60 = vpop.f32.mrb[1].mxu0  ;;  %v321_v57 = vpop.permute.xlu1 %320 }
 0x18e   :  { %v185_v61 = vadd.f32 %v184_v60, %v117_v56  ;;  %v186_v62 = vpop.f32.mrb[2].mxu0 }
 0x18f   :  { %479 = vtanh.f32 %v183_v59  ;;  %v187_v63 = vadd.f32 %v186_v62, %v121_v58  ;;  %v188_v0 = vpop.f32.mrb[3].mxu0 }
 0x190   :  { %481 = vtanh.f32 %v185_v61  ;;  %v189_v3 = vadd.f32 %v188_v0, %v121_v58 }
 0x191   :  { %483 = vtanh.f32 %v187_v63 }
 0x192   :  { %485 = vtanh.f32 %v189_v3  ;;  %v325_v3 = vpop.permute.xlu1 %324 }
 0x194   :  { %v192_v4 = vpop.f32.mrb[4].mxu0 }
 0x195   :  { %v193_v6 = vadd.f32 %v192_v4, %v125_v2  ;;  %v194_v9 = vpop.f32.mrb[5].mxu0 }
 0x196   :  { %v195_v5 = vadd.f32 %v194_v9, %v125_v2  ;;  %v196_v11 = vpop.f32.mrb[6].mxu0 }
 0x197   :  { %487 = vtanh.f32 %v193_v6  ;;  %v197_v12 = vadd.f32 %v196_v11, %v129_v10  ;;  %v198_v13 = vpop.f32.mrb[7].mxu0 }
 0x198   :  { %489 = vtanh.f32 %v195_v5  ;;  %v199_v14 = vadd.f32 %v198_v13, %v129_v10 }
 0x199   :  { %v480_v15 = vpop.eup %479  ;;  %491 = vtanh.f32 %v197_v12 }
 0x19a   :  { %v482_v16 = vpop.eup %481  ;;  %493 = vtanh.f32 %v199_v14 }
 0x19b   :  { %v484_v17 = vpop.eup %483 }
 0x19c   :  { %v486_v18 = vpop.eup %485  ;;  %v214_v19 = vpack.c.bf16 %v484_v17, %v480_v15 }
 0x19d   :  { %v215_v20 = vpack.c.bf16 %v486_v18, %v482_v16 }
 0x19f   :  { %250 = vmatprep.subr.bf16.mxu1 %v215_v20 }
 0x1a0   :  { %251 = vmatpush1.bf16.msra.mxu1 %v214_v19 }
 0x1a1   :  { %v488_v21 = vpop.eup %487 }
 0x1a2   :  { %v490_v22 = vpop.eup %489 }
 0x1a3   :  { %v492_v23 = vpop.eup %491 }
 0x1a4   :  { %v494_v24 = vpop.eup %493  ;;  %v216_v25 = vpack.c.bf16 %v492_v23, %v488_v21 }
 0x1a5   :  { %v217_v26 = vpack.c.bf16 %v494_v24, %v490_v22 }
 0x1a7   :  { %252 = vmatprep.subr.bf16.mxu1 %v217_v26 }
 0x1a8   :  { %253 = vmatpush1.bf16.msra.mxu1 %v216_v25 }
 0x1ab   :  { %434 = vmatmul.mubr.msk.bf16.vlgmr.msra.gmra.mrb[0].mxu1 %vm141_vm0, %v461_v27 }
 0x1ac   :  { %292 = vmatprep.mubr.bf16.mxu1 %v571_v1  ;;  %v232_v1 = vpop.permute.xlu0 %231 }
 0x1b0   :  { %v317_v50 = vpop.permute.xlu0 %316 }
 0x1b3   :  { %435 = vmatmul.mubr.msk.bf16.gmra.mrb[4].mxu1 %vm141_vm0, %v462_v28 }
 0x1b4   :  { %v356_v22 = vpop.permute.xlu0 %355 }
 0x27e   :  { %v284_v31 = vpop.f32.mrb[0].mxu1 }
 0x27f   :  { %v285_v32 = vadd.f32 %v284_v31, %v220_v29  ;;  %v286_v33 = vpop.f32.mrb[1].mxu1 }
 0x280   :  { %v287_v34 = vadd.f32 %v286_v33, %v220_v29  ;;  %v288_v35 = vpop.f32.mrb[2].mxu1 }
 0x281   :  { %495 = vtanh.f32 %v285_v32  ;;  %v289_v36 = vadd.f32 %v288_v35, %v224_v30  ;;  %v290_v37 = vpop.f32.mrb[3].mxu1 }
 0x282   :  { %497 = vtanh.f32 %v287_v34  ;;  %v291_v38 = vadd.f32 %v290_v37, %v224_v30 }
 0x283   :  { %499 = vtanh.f32 %v289_v36 }
 0x284   :  { %501 = vtanh.f32 %v291_v38 }
 0x286   :  { %v294_v40 = vpop.f32.mrb[4].mxu1 }
 0x287   :  { %v295_v41 = vadd.f32 %v294_v40, %v228_v39  ;;  %v296_v42 = vpop.f32.mrb[5].mxu1 }
 0x288   :  { %v297_v43 = vadd.f32 %v296_v42, %v228_v39  ;;  %v298_v44 = vpop.f32.mrb[6].mxu1 }
 0x289   :  { %503 = vtanh.f32 %v295_v41  ;;  %v299_v46 = vadd.f32 %v298_v44, %v232_v1  ;;  %v300_v47 = vpop.f32.mrb[7].mxu1 }
 0x28a   :  { %505 = vtanh.f32 %v297_v43  ;;  %v301_v48 = vadd.f32 %v300_v47, %v232_v1  ;;  %v576_v1 = vmov 1966171168  }
 0x28b   :  { %v496_v49 = vpop.eup %495  ;;  %507 = vtanh.f32 %v299_v46  ;;  %v394_v41 = vunpack.c.l.s4 %v576_v1 }
 0x28c   :  { %v498_v51 = vpop.eup %497  ;;  %509 = vtanh.f32 %v301_v48  ;;  %v327_v54 = vmul.f32 %v496_v49, %v313_v45 }
 0x28d   :  { %v500_v52 = vpop.eup %499  ;;  %v328_v56 = vmul.f32 %v498_v51, %v313_v45  ;;  %v395_v49 = vunpack.c.0.s8 %v394_v41 }
 0x28e   :  { %v502_v53 = vpop.eup %501  ;;  %v329_v55 = vmul.f32 %v500_v52, %v317_v50 }
 0x28f   :  { %v330_v58 = vmul.f32 %v502_v53, %v317_v50 }
 0x290   :  { %v335_v59 = vadd.f32 %v329_v55, %v327_v54 }
 0x291   :  { %v344_v60 = vadd.f32 %v330_v58, %v328_v56  ;;  %v398_v58 = vsub.s32 %v395_v49, %v647_v8 }
 0x293   :  { %v504_v61 = vpop.eup %503 }
 0x294   :  { %v506_v62 = vpop.eup %505  ;;  %v331_v63 = vmul.f32 %v504_v61, %v321_v57 }
 0x295   :  { %v508_v0 = vpop.eup %507  ;;  %v332_v2 = vmul.f32 %v506_v62, %v321_v57 }
 0x296   :  { %v510_v4 = vpop.eup %509  ;;  %v333_v6 = vmul.f32 %v508_v0, %v325_v3  ;;  %v336_v9 = vadd.f32 %v335_v59, %v331_v63 }
 0x297   :  { %v334_v10 = vmul.f32 %v510_v4, %v325_v3  ;;  %v345_v5 = vadd.f32 %v344_v60, %v332_v2 }
 0x298   :  { %v337_v11 = vadd.f32 %v336_v9, %v333_v6 }
 0x299   :  { %v346_v12 = vadd.f32 %v345_v5, %v334_v10 }
 0x29a   :  { %v338_v13 = vrot.slane %v337_v11, 4 }
 0x29b   :  { %v347_v14 = vrot.slane %v346_v12, 4 }
 0x29c   :  { %v339_v15 = vadd.f32 %v338_v13, %v337_v11 }
 0x29d   :  { %v348_v16 = vadd.f32 %v347_v14, %v346_v12 }
 0x29e   :  { %v340_v17 = vrot.slane %v339_v15, 2 }
 0x29f   :  { %v349_v18 = vrot.slane %v348_v16, 2 }
 0x2a0   :  { %v341_v19 = vadd.f32 %v340_v17, %v339_v15 }
 0x2a1   :  { %v350_v20 = vadd.f32 %v349_v18, %v348_v16 }
 0x2a2   :  { %v342_v21 = vrot.slane %v341_v19, 1 }
 0x2a3   :  { %v351_v23 = vrot.slane %v350_v20, 1 }
 0x2a4   :  { %v343_v24 = vadd.f32 %v342_v21, %v341_v19 }
 0x2a5   :  { %v352_v25 = vadd.f32 %v351_v23, %v350_v20 }
 0x2a6   :  { %v358_v26 = vadd.f32 %v356_v22, %v343_v24 }
 0x2a7   :  { %v359_v27 = vadd.f32 %v356_v22, %v352_v25 }
 0x2a8   :  { %v362_v28 = vand.u32 2147483647, %v358_v26  ;;  %v360_v50 = vmax.f32 %v358_v26, 0.0 }
 0x2a9   :  { %v363_v29 = vand.u32 2147483647, %v359_v27  ;;  %v361_v53 = vmax.f32 %v359_v27, 0.0 }
 0x2aa   :  { %v364_v30 = vsub.f32 0.0, %v362_v28 }
 0x2ab   :  { %v365_v31 = vsub.f32 0.0, %v363_v29 }
 0x2ac   :  { %v366_v32 = vmul.f32 1.442695, %v364_v30 }
 0x2ad   :  { %v368_v33 = vmul.f32 1.442695, %v365_v31 }
 0x2ae   :  { %511 = vpow2.f32 %v366_v32 }
 0x2af   :  { %513 = vpow2.f32 %v368_v33 }
 0x2b8   :  { %v512_v34 = vpop.eup %511 }
 0x2b9   :  { %v514_v35 = vpop.eup %513  ;;  %v370_v36 = vadd.f32 1.0, %v512_v34  ;;  %v373_v38 = vmul.f32 -0.5, %v512_v34  ;;  %v376_v42 = vand.u32 2147483647, %v512_v34 }
 0x2ba   :  { %v379_v37 = vadd.f32 1.0, %v514_v35  ;;  %v382_v39 = vmul.f32 -0.5, %v514_v35  ;;  %v385_v44 = vand.u32 2147483647, %v514_v35 }
 0x2bb   :  { %515 = vlog2.f32 %v370_v36  ;;  %v374_v40 = vadd.f32 1.0, %v373_v38  ;;  %vm377_vm1 = vcmp.lt.f32.partialorder %v376_v42, 0.0004427343 }
 0x2bc   :  { %517 = vlog2.f32 %v379_v37  ;;  %v383_v43 = vadd.f32 1.0, %v382_v39  ;;  %vm386_vm2 = vcmp.lt.f32.partialorder %v385_v44, 0.0004427343 }
 0x2bd   :  { %v375_v48 = vmul.f32 %v512_v34, %v374_v40 }
 0x2be   :  { %v384_v52 = vmul.f32 %v514_v35, %v383_v43 }
 0x2c5   :  { %v516_v45 = vpop.eup %515 }
 0x2c6   :  { %v518_v46 = vpop.eup %517  ;;  %v372_v47 = vmul.f32 0.6931472, %v516_v45 }
 0x2c7   :  { %v381_v51 = vmul.f32 0.6931472, %v518_v46 }
 0x2c8   :  { %v378_v54 = vsel %vm377_vm1, %v375_v48, %v372_v47 }
 0x2c9   :  { %v387_v55 = vsel %vm386_vm2, %v384_v52, %v381_v51  ;;  %v388_v56 = vadd.f32 %v378_v54, %v360_v50 }
 0x2ca   :  { %v389_v57 = vadd.f32 %v387_v55, %v361_v53 }
 0x2cc   :  { %v392_v59 = vcombine.low %v388_v56, %v389_v57 }
 0x2ce   :  { %v399_v60 = vrot.slane %v392_v59, %v398_v58 }
 0x2d0   :  { %v406_v61 = vrot.slane %v399_v60, %v398_v58 }
 0x2d2   :  { %412 = vst.msk [vmem:[#allocation5] sm:$0x3] %vm410_vm3, %v406_v61 }
 0x2d3   :  { %552 = shalt.err (!%p549_p12)
}
 0x2d4   :  { %s553_s13 = scalar_lea.hbm %s688_s3, 32 }
 0x2d5   :  { %p554_p13 = scmp.ne.s32.totalorder %s688_s3, %s553_s13  ;;  %p557_p0 = scmp.lt.u32.totalorder %s553_s13, %s688_s3 }
 0x2d7   :  { %p559_p1 = pnand %p557_p0, %p554_p13 }
 0x2d9   :  { %562 = shalt.err (!%p559_p1)
}
 0x2da   :  { %422 = dma.vmem_to_hbm [thread:$0]  %s420_s9, 32, %s688_s3, [#allocation4]  }
 0x2db   :  { %565 = dma.done.wait [#allocation4], 32  }
 0x2dc   :  { %566 = vsyncadd [#allocation4], 4294967264 }
 0x2dd   :  { %426 = vsyncpa [#allocation3], 1 }
 0x2de   :  { %427 = vsyncpa [#allocation4], 1 }

</bundles_post_ra>
